<compile_context>
chip_gen: v7x
topology: tpu7x:2x2x1
jax: 0.10.0
libtpu: 0.0.40
codegen_flags: <defaults>
</compile_context>

<pallas_src>
import functools
import math

import jax
import jax.numpy as jnp
from jax.experimental import pallas as pl
from jax.experimental.pallas import tpu as pltpu


def _round_up(x, m):
    return ((x + m - 1) // m) * m


def _vmem_budget_bytes():
    """Generation-aware scoped-VMEM budget (leave ~25% headroom for the compiler)."""
    cap = 64 << 20  # conservative default = v7x per-TensorCore VMEM
    try:
        cap = int(getattr(pltpu.get_tpu_info(), "vmem_capacity_bytes", cap))
    except Exception:
        pass
    # ~96 MiB on v5e/v6e (128 MiB VMEM), ~48 MiB on v7x (64 MiB VMEM).
    return (cap * 3) // 4


def _vmem_limit_bytes(need_bytes):
    return int(min(max(4 * need_bytes, 16 << 20), _vmem_budget_bytes()))


# ---------------------------------------------------------------------------
# Fused linear projections sharing one input:  y_i = x @ W_i^T (+ b_i)
# ---------------------------------------------------------------------------
def _make_linear_kernel(nw, has_bias):
    nb = sum(has_bias)

    def kernel(*refs):
        x_ref = refs[0]
        w_refs = refs[1:1 + nw]
        b_refs = refs[1 + nw:1 + nw + nb]
        o_refs = refs[1 + nw + nb:]
        x = x_ref[...]                       # native dtype into the MXU, read once
        bi = 0
        for i in range(nw):
            # y = x @ W^T without materializing W^T: contract last dims on the MXU,
            # accumulate in f32, single cast on store.
            acc = jax.lax.dot_general(
                x, w_refs[i][...], (((1,), (1,)), ((), ())),
                preferred_element_type=jnp.float32)
            if has_bias[i]:
                acc = acc + b_refs[bi][...].astype(jnp.float32)
                bi += 1
            o_refs[i][...] = acc.astype(o_refs[i].dtype)

    return kernel


def _linear_multi(x2d, weights, biases=None, *, tm=512):
    """Shared-input fused projections.

    x2d: (tokens, d_in); weights[i]: (d_out_i, d_in) (PyTorch nn.Linear layout);
    biases[i]: (d_out_i,) or None. Returns a tuple of (tokens, d_out_i) arrays.
    The activation tile is streamed from HBM once for all outputs.
    """
    nw = len(weights)
    if biases is None:
        biases = [None] * nw
    has_bias = tuple(b is not None for b in biases)

    tokens, d_in = x2d.shape
    d_outs = [int(w.shape[0]) for w in weights]

    def footprint(tile_m):
        n = 2 * tile_m * d_in * x2d.dtype.itemsize            # x, double-buffered
        for w, b, d_o in zip(weights, biases, d_outs):
            n += w.dtype.itemsize * d_in * d_o                 # weight, single-buffered
            n += 2 * tile_m * d_o * x2d.dtype.itemsize         # out, double-buffered
            if b is not None:
                n += b.dtype.itemsize * d_o
        return n

    # Large MXU-aligned token tile, clamped to the token count and the VMEM budget.
    budget = _vmem_budget_bytes()
    tm = _round_up(min(tm, _round_up(tokens, 8)), 8)
    while tm > 64 and footprint(tm) > budget:
        tm //= 2
    # TODO(synk): for very large d_model (a single weight close to the VMEM budget,
    # esp. on v7x) add a d_out grid axis so only a (tn, d_in) weight slab is resident.

    tokens_p = _round_up(tokens, tm)
    if tokens_p != tokens:
        x2d = jnp.pad(x2d, ((0, tokens_p - tokens), (0, 0)))

    grid = (tokens_p // tm,)
    in_specs = [pl.BlockSpec((tm, d_in), lambda i: (i, 0))]
    args = [x2d]
    for w, d_o in zip(weights, d_outs):
        # Grid-invariant weights: single-buffered; only x/out tiles are double-buffered.
        in_specs.append(pl.BlockSpec((d_o, d_in), lambda i: (0, 0),
                                     pipeline_mode=pl.Buffered(1)))
        args.append(w)
    for b, d_o in zip(biases, d_outs):
        if b is not None:
            in_specs.append(pl.BlockSpec((1, d_o), lambda i: (0, 0),
                                         pipeline_mode=pl.Buffered(1)))
            args.append(b.reshape(1, d_o))
    out_specs = [pl.BlockSpec((tm, d_o), lambda i: (i, 0)) for d_o in d_outs]
    out_shape = tuple(jax.ShapeDtypeStruct((tokens_p, d_o), x2d.dtype) for d_o in d_outs)

    itemsize = x2d.dtype.itemsize
    cost = pl.CostEstimate(
        flops=2 * tokens_p * d_in * sum(d_outs),
        transcendentals=0,
        bytes_accessed=itemsize * (tokens_p * (d_in + sum(d_outs))
                                   + d_in * sum(d_outs) + sum(d_outs)),
    )

    outs = pl.pallas_call(
        _make_linear_kernel(nw, has_bias),
        out_shape=out_shape,
        grid_spec=pltpu.PrefetchScalarGridSpec(
            num_scalar_prefetch=0,
            grid=grid,
            in_specs=in_specs,
            out_specs=out_specs,
        ),
        compiler_params=pltpu.CompilerParams(
            dimension_semantics=("parallel",),
            vmem_limit_bytes=_vmem_limit_bytes(footprint(tm)),
        ),
        cost_estimate=cost,
    )(*args)

    if tokens_p != tokens:
        outs = tuple(o[:tokens] for o in outs)
    return tuple(outs)


# ---------------------------------------------------------------------------
# Flash-style multi-head attention (online softmax over a kv grid axis)
# ---------------------------------------------------------------------------
def _pick_head_group(head_num, d_k):
    """Smallest divisor g of head_num such that g*d_k is a multiple of 128
    (lane-dense blocks / output stores); fall back to all heads, in which case
    the block spans the full d_model dim (always a legal block shape)."""
    for g in range(1, head_num + 1):
        if head_num % g == 0 and (g * d_k) % 128 == 0:
            return g
    return head_num


def _attention_kernel(q_ref, k_ref, v_ref, o_ref, m_sc, l_sc, acc_sc, *,
                      hg, d_k, scale, kv_len, block_kv, needs_mask):
    kv = pl.program_id(2)

    @pl.when(kv == 0)
    def _():
        m_sc[...] = jnp.full(m_sc.shape, -jnp.inf, dtype=m_sc.dtype)
        l_sc[...] = jnp.zeros(l_sc.shape, dtype=l_sc.dtype)
        acc_sc[...] = jnp.zeros(acc_sc.shape, dtype=acc_sc.dtype)

    if needs_mask:
        col = kv * block_kv + jax.lax.broadcasted_iota(jnp.int32, (1, block_kv), 1)
        valid = col < kv_len

    # Softmax scale folded into Q (O(tq*hg*d_k) instead of O(tq*tkv) multiplies).
    q_all = q_ref[0] * scale          # (tq, hg*d_k), native dtype
    k_all = k_ref[0]                  # (tkv, hg*d_k)
    v_all = v_ref[0]

    # Unrolled per-head loop (hg heads share this grid step): clean 2-D MXU
    # matmuls, online-softmax state in f32 VMEM scratch.
    for h in range(hg):
        hs, he = h * d_k, (h + 1) * d_k
        q = q_all[:, hs:he]
        k = k_all[:, hs:he]
        v = v_all[:, hs:he]

        # (tq, tkv) scores, f32 accumulation, no transpose copy of K.
        s = jax.lax.dot_general(q, k, (((1,), (1,)), ((), ())),
                                preferred_element_type=jnp.float32)
        if needs_mask:
            s = jnp.where(valid, s, -1e30)   # only the padded tail tile is masked

        m_prev = m_sc[h]
        m_new = jnp.maximum(m_prev, jnp.max(s, axis=-1, keepdims=True))
        alpha = jnp.exp(m_prev - m_new)
        p = jnp.exp(s - m_new)               # the only O(S^2) non-MXU op
        l_sc[h] = alpha * l_sc[h] + jnp.sum(p, axis=-1, keepdims=True)
        acc_sc[h] = alpha * acc_sc[h] + jax.lax.dot_general(
            p.astype(v.dtype), v, (((1,), (0,)), ((), ())),
            preferred_element_type=jnp.float32)
        m_sc[h] = m_new

    @pl.when(kv == pl.num_programs(2) - 1)
    def _():
        # Deferred normalization: one (tq, d_k) multiply per head, reciprocal on the
        # EUP.  The HBM-facing output block is the lane-dense (tq, hg*d_k) slab.
        for h in range(hg):
            hs, he = h * d_k, (h + 1) * d_k
            inv = pl.reciprocal(l_sc[h], approx=True)
            o_ref[0, :, hs:he] = (acc_sc[h] * inv).astype(o_ref.dtype)


def _attention(q, k, v, *, head_num, tq=256, tkv=512):
    """q: (B, Sq, d_model); k, v: (B, Sk, d_model)  ->  (B, Sq, d_model).
    Heads are indexed through the BlockSpecs (no split/merge transposes in XLA)."""
    B, Sq, d_model = q.shape
    Sk = k.shape[1]
    d_k = d_model // head_num
    scale = 1.0 / math.sqrt(d_k)

    hg = _pick_head_group(head_num, d_k)     # heads per grid step
    Hg = head_num // hg                      # head groups
    hgd = hg * d_k                           # lane width of each block

    tq = _round_up(min(tq, _round_up(Sq, 8)), 8)
    Sq_p = _round_up(Sq, tq)
    tkv = _round_up(min(tkv, _round_up(Sk, 8)), 8)
    Sk_p = _round_up(Sk, tkv)
    needs_mask = Sk_p != Sk

    if Sq_p != Sq:
        q = jnp.pad(q, ((0, 0), (0, Sq_p - Sq), (0, 0)))
    if Sk_p != Sk:
        k = jnp.pad(k, ((0, 0), (0, Sk_p - Sk), (0, 0)))
        v = jnp.pad(v, ((0, 0), (0, Sk_p - Sk), (0, 0)))

    grid = (B * Hg, Sq_p // tq, Sk_p // tkv)

    kernel = functools.partial(
        _attention_kernel, hg=hg, d_k=d_k, scale=scale,
        kv_len=Sk, block_kv=tkv, needs_mask=needs_mask)

    itemsize = q.dtype.itemsize
    need = (4 * tq * hgd + 4 * tkv * hgd) * itemsize \
        + hg * (2 * tq + tq * d_k) * 4 + 2 * tq * tkv * 4

    out = pl.pallas_call(
        kernel,
        out_shape=jax.ShapeDtypeStruct((B, Sq_p, d_model), q.dtype),
        grid_spec=pltpu.PrefetchScalarGridSpec(
            num_scalar_prefetch=0,
            grid=grid,
            in_specs=[
                pl.BlockSpec((1, tq, hgd), lambda b, i, j: (b // Hg, i, b % Hg)),
                pl.BlockSpec((1, tkv, hgd), lambda b, i, j: (b // Hg, j, b % Hg)),
                pl.BlockSpec((1, tkv, hgd), lambda b, i, j: (b // Hg, j, b % Hg)),
            ],
            out_specs=pl.BlockSpec((1, tq, hgd), lambda b, i, j: (b // Hg, i, b % Hg)),
            scratch_shapes=[
                pltpu.VMEM((hg, tq, 1), jnp.float32),     # running max
                pltpu.VMEM((hg, tq, 1), jnp.float32),     # running sum
                pltpu.VMEM((hg, tq, d_k), jnp.float32),   # unnormalized output
            ],
        ),
        compiler_params=pltpu.CompilerParams(
            dimension_semantics=("parallel", "parallel", "arbitrary"),
            vmem_limit_bytes=_vmem_limit_bytes(need),
        ),
        cost_estimate=pl.CostEstimate(
            flops=4 * B * head_num * Sq_p * Sk_p * d_k,
            transcendentals=B * head_num * Sq_p * Sk_p,
            bytes_accessed=itemsize * B * d_model * (2 * Sq_p + 2 * Sk_p),
        ),
    )(q, k, v)

    if Sq_p != Sq:
        out = out[:, :Sq]
    return out


# ---------------------------------------------------------------------------
# Full MultiHeadAttention forward (eval mode, no masks)
# ---------------------------------------------------------------------------
def multi_head_attention(query, key, value, wq, wk, wv, wo, bo, *, head_num, tm=512):
    """query: (B, Sq, d_model); key/value: (B, Sk, d_model).
    wq/wk/wv/wo: (d_model, d_model) in PyTorch nn.Linear layout; bo: (d_model,)."""
    # TODO(synk): mask / attention_mask branches and training-mode dropout are not
    # implemented (unmasked inference path only).
    B, Sq, d_model = query.shape
    Sk = key.shape[1]
    assert d_model % head_num == 0

    # Q/K/V projections fused whenever the inputs are shared (reads x from HBM once).
    if query is key and key is value:
        q2d, k2d, v2d = _linear_multi(query.reshape(B * Sq, d_model),
                                      [wq, wk, wv], tm=tm)
    elif key is value:
        (q2d,) = _linear_multi(query.reshape(B * Sq, d_model), [wq], tm=tm)
        k2d, v2d = _linear_multi(key.reshape(B * Sk, d_model), [wk, wv], tm=tm)
    else:
        (q2d,) = _linear_multi(query.reshape(B * Sq, d_model), [wq], tm=tm)
        (k2d,) = _linear_multi(key.reshape(B * Sk, d_model), [wk], tm=tm)
        (v2d,) = _linear_multi(value.reshape(B * Sk, d_model), [wv], tm=tm)

    # Free reshapes only — head split/merge is handled inside the attention BlockSpecs.
    q3 = q2d.reshape(B, Sq, d_model)
    k3 = k2d.reshape(B, Sk, d_model)
    v3 = v2d.reshape(B, Sk, d_model)

    ctx = _attention(q3, k3, v3, head_num=head_num)        # (B, Sq, d_model)

    # Final projection with bias; output dropout is identity at inference.
    (out,) = _linear_multi(ctx.reshape(B * Sq, d_model), [wo], [bo], tm=tm)
    return out.reshape(B, Sq, d_model)


if __name__ == "__main__":
    key0 = jax.random.PRNGKey(0)
    kx, k_q, k_k, k_v, k_o, k_b = jax.random.split(key0, 6)

    batch, seq, d_model, head_num = 2, 8, 32, 4
    d_k = d_model // head_num
    bound = 1.0 / math.sqrt(d_model)

    x = jax.random.normal(kx, (batch, seq, d_model), jnp.float32)
    wq = jax.random.uniform(k_q, (d_model, d_model), jnp.float32, -bound, bound)
    wk = jax.random.uniform(k_k, (d_model, d_model), jnp.float32, -bound, bound)
    wv = jax.random.uniform(k_v, (d_model, d_model), jnp.float32, -bound, bound)
    wo = jax.random.uniform(k_o, (d_model, d_model), jnp.float32, -bound, bound)
    bo = jax.random.uniform(k_b, (d_model,), jnp.float32, -bound, bound)

    out = multi_head_attention(x, x, x, wq, wk, wv, wo, bo, head_num=head_num)
    out = jax.block_until_ready(out)

    # Pure-JAX reference (same math as the PyTorch module in eval mode, no masks).
    hp = jax.lax.Precision.HIGHEST
    Q = jnp.einsum("bsd,od->bso", x, wq, precision=hp)
    K = jnp.einsum("bsd,od->bso", x, wk, precision=hp)
    V = jnp.einsum("bsd,od->bso", x, wv, precision=hp)
    Q = Q.reshape(batch, seq, head_num, d_k).transpose(0, 2, 1, 3)
    K = K.reshape(batch, seq, head_num, d_k).transpose(0, 2, 1, 3)
    V = V.reshape(batch, seq, head_num, d_k).transpose(0, 2, 1, 3)
    s = jnp.einsum("bhqd,bhkd->bhqk", Q, K, precision=hp) / math.sqrt(d_k)
    p = jax.nn.softmax(s, axis=-1)
    ctx = jnp.einsum("bhqk,bhkd->bhqd", p, V, precision=hp)
    ctx = ctx.transpose(0, 2, 1, 3).reshape(batch, seq, d_model)
    ref = jnp.einsum("bsd,od->bso", ctx, wo, precision=hp) + bo

    assert out.shape == (batch, seq, d_model)
    # Tolerance accounts for the EUP approximate reciprocal in the softmax
    # normalization and default (non-HIGHEST) MXU precision inside the kernels.
    assert jnp.allclose(out, ref, atol=2e-3, rtol=2e-3), float(
        jnp.max(jnp.abs(out - ref))
    )

    print("KERNEL_OK")
</pallas_src>

<mosaic_0001>
module attributes {stable_mosaic.version = 11 : i64} {
  func.func @kernel(%arg0: i32, %arg1: memref<16x32xf32, #tpu.memory_space<vmem>>, %arg2: memref<32x32xf32, #tpu.memory_space<vmem>>, %arg3: memref<32x32xf32, #tpu.memory_space<vmem>>, %arg4: memref<32x32xf32, #tpu.memory_space<vmem>>, %arg5: memref<16x32xf32, #tpu.memory_space<vmem>>, %arg6: memref<16x32xf32, #tpu.memory_space<vmem>>, %arg7: memref<16x32xf32, #tpu.memory_space<vmem>>) attributes {dimension_semantics = [#tpu.dimension_semantics<parallel>], iteration_bounds = array<i64: 1>, scalar_prefetch = 0 : i64, scratch_operands = 0 : i64, tpu.core_type = #tpu.core_type<tc>, window_params = [{transform_indices = @transform_0, window_bounds = array<i64: 16, 32>}, {pipeline_mode = #tpu.pipeline_mode<synchronous>, transform_indices = @transform_1, window_bounds = array<i64: 32, 32>}, {pipeline_mode = #tpu.pipeline_mode<synchronous>, transform_indices = @transform_2, window_bounds = array<i64: 32, 32>}, {pipeline_mode = #tpu.pipeline_mode<synchronous>, transform_indices = @transform_3, window_bounds = array<i64: 32, 32>}, {transform_indices = @transform_4, window_bounds = array<i64: 16, 32>}, {transform_indices = @transform_5, window_bounds = array<i64: 16, 32>}, {transform_indices = @transform_6, window_bounds = array<i64: 16, 32>}]} {
    %c0 = arith.constant 0 : index
    %c0_0 = arith.constant 0 : index
    %0 = vector.load %arg1[%c0, %c0_0] : memref<16x32xf32, #tpu.memory_space<vmem>>, vector<16x32xf32>
    %c0_1 = arith.constant 0 : index
    %c0_2 = arith.constant 0 : index
    %1 = vector.load %arg2[%c0_1, %c0_2] : memref<32x32xf32, #tpu.memory_space<vmem>>, vector<32x32xf32>
    %cst = arith.constant dense<0.000000e+00> : vector<16x32xf32>
    %2 = tpu.matmul %0, %1, %cst {dimension_numbers = #tpu.dot_dimension_numbers<[1], [1], [0], [0], [0, 0, 1, 0], [], []>} : vector<16x32xf32>, vector<32x32xf32>, vector<16x32xf32> -> vector<16x32xf32>
    %c0_3 = arith.constant 0 : index
    %c0_4 = arith.constant 0 : index
    %3 = vector.load %arg5[%c0_3, %c0_4] : memref<16x32xf32, #tpu.memory_space<vmem>>, vector<16x32xf32>
    tpu.vector_store %arg5[%c0_3, %c0_4], %2 {strides = array<i32>} : memref<16x32xf32, #tpu.memory_space<vmem>>, vector<16x32xf32>,
    %c0_5 = arith.constant 0 : index
    %c0_6 = arith.constant 0 : index
    %4 = vector.load %arg3[%c0_5, %c0_6] : memref<32x32xf32, #tpu.memory_space<vmem>>, vector<32x32xf32>
    %cst_7 = arith.constant dense<0.000000e+00> : vector<16x32xf32>
    %5 = tpu.matmul %0, %4, %cst_7 {dimension_numbers = #tpu.dot_dimension_numbers<[1], [1], [0], [0], [0, 0, 1, 0], [], []>} : vector<16x32xf32>, vector<32x32xf32>, vector<16x32xf32> -> vector<16x32xf32>
    %c0_8 = arith.constant 0 : index
    %c0_9 = arith.constant 0 : index
    %6 = vector.load %arg6[%c0_8, %c0_9] : memref<16x32xf32, #tpu.memory_space<vmem>>, vector<16x32xf32>
    tpu.vector_store %arg6[%c0_8, %c0_9], %5 {strides = array<i32>} : memref<16x32xf32, #tpu.memory_space<vmem>>, vector<16x32xf32>,
    %c0_10 = arith.constant 0 : index
    %c0_11 = arith.constant 0 : index
    %7 = vector.load %arg4[%c0_10, %c0_11] : memref<32x32xf32, #tpu.memory_space<vmem>>, vector<32x32xf32>
    %cst_12 = arith.constant dense<0.000000e+00> : vector<16x32xf32>
    %8 = tpu.matmul %0, %7, %cst_12 {dimension_numbers = #tpu.dot_dimension_numbers<[1], [1], [0], [0], [0, 0, 1, 0], [], []>} : vector<16x32xf32>, vector<32x32xf32>, vector<16x32xf32> -> vector<16x32xf32>
    %c0_13 = arith.constant 0 : index
    %c0_14 = arith.constant 0 : index
    %9 = vector.load %arg7[%c0_13, %c0_14] : memref<16x32xf32, #tpu.memory_space<vmem>>, vector<16x32xf32>
    tpu.vector_store %arg7[%c0_13, %c0_14], %8 {strides = array<i32>} : memref<16x32xf32, #tpu.memory_space<vmem>>, vector<16x32xf32>,
    return
  }
  func.func @transform_0(%arg0: i32) -> (i32, i32) {
    %c0_i32 = arith.constant 0 : i32
    %c0_i32_0 = arith.constant 0 : i32
    return %arg0, %c0_i32 : i32, i32
  }
  func.func @transform_1(%arg0: i32) -> (i32, i32) {
    %c0_i32 = arith.constant 0 : i32
    %c0_i32_0 = arith.constant 0 : i32
    %c0_i32_1 = arith.constant 0 : i32
    return %c0_i32, %c0_i32_0 : i32, i32
  }
  func.func @transform_2(%arg0: i32) -> (i32, i32) {
    %c0_i32 = arith.constant 0 : i32
    %c0_i32_0 = arith.constant 0 : i32
    %c0_i32_1 = arith.constant 0 : i32
    return %c0_i32, %c0_i32_0 : i32, i32
  }
  func.func @transform_3(%arg0: i32) -> (i32, i32) {
    %c0_i32 = arith.constant 0 : i32
    %c0_i32_0 = arith.constant 0 : i32
    %c0_i32_1 = arith.constant 0 : i32
    return %c0_i32, %c0_i32_0 : i32, i32
  }
  func.func @transform_4(%arg0: i32) -> (i32, i32) {
    %c0_i32 = arith.constant 0 : i32
    %c0_i32_0 = arith.constant 0 : i32
    return %arg0, %c0_i32 : i32, i32
  }
  func.func @transform_5(%arg0: i32) -> (i32, i32) {
    %c0_i32 = arith.constant 0 : i32
    %c0_i32_0 = arith.constant 0 : i32
    return %arg0, %c0_i32 : i32, i32
  }
  func.func @transform_6(%arg0: i32) -> (i32, i32) {
    %c0_i32 = arith.constant 0 : i32
    %c0_i32_0 = arith.constant 0 : i32
    return %arg0, %c0_i32 : i32, i32
  }
}

</mosaic_0001>

<bundles_post_ra>
// kernel: tpu_custom_call.1
= control target key start
LH: loop header
LB: loop body
LE: loop exit
PB: predicated region body
PF: predicated region fallthrough
CT: control target
= control target key end

     0   :  { %12 = vsyncpa [#allocation3], 0  ;;  %s905_s0 = inlined_call_operand.hbm [shape: f32[16,32], index: 0, kind: input, shape index: {}]   ;;  %s906_s1 = inlined_call_operand.hbm [shape: f32[32,32], index: 1, kind: input, shape index: {}]   ;;  %s907_s2 = inlined_call_operand.hbm [shape: f32[32,32], index: 2, kind: input, shape index: {}]   ;;  %s908_s3 = inlined_call_operand.hbm [shape: f32[32,32], index: 3, kind: input, shape index: {}]   ;;  %s909_s4 = inlined_call_operand.hbm [shape: f32[16,32], index: 4, kind: output, shape index: {0}]   ;;  %s910_s5 = inlined_call_operand.hbm [shape: f32[16,32], index: 5, kind: output, shape index: {1}]   ;;  %s911_s6 = inlined_call_operand.hbm [shape: f32[16,32], index: 6, kind: output, shape index: {2}]  }
   0x1   :  { %13 = vsyncpa [#allocation6], 0 }
   0x2   :  { %14 = vsyncpa [#allocation9], 0 }
   0x3   :  { %15 = vsyncpa [#allocation4], 0 }
   0x4   :  { %16 = vsyncpa [#allocation12], 0  ;;  %s693_s21 = smov [#allocation5]   ;;  %s694_s23 = smov [#allocation2]  }
   0x5   :  { %s34_s22 = sshll.u32 %s693_s21, 4  ;;  %s22_s24 = sshll.u32 %s694_s23, 4  ;;  %s35_s22 = int_to_ptr.vmem [resolvable:$true] %s34_s22  ;;  %s737_s24 = int_to_ptr.vmem [resolvable:$true] %s22_s24 }
   0x6   :  { %s529_s27 = scalar_lea.hbm %s906_s1, 512 }
   0x7   :  { %p530_p0 = scmp.ne.s32.totalorder %s906_s1, %s529_s27  ;;  %p533_p1 = scmp.lt.u32.totalorder %s529_s27, %s906_s1 }
   0x9   :  { %p535_p2 = pnand %p533_p1, %p530_p0 }
   0xb   :  { %538 = shalt.err (!%p535_p2)
}
   0xc   :  { %s539_s8 = scalar_lea.vmem %s35_s22, 512  ;;  %p544_p4 = scmp.lt.s32.totalorder %s35_s22, %s35_s22 }
   0xd   :  { %p540_p3 = scmp.ne.s32.totalorder %s35_s22, %s539_s8  ;;  %p545_p5 = scmp.lt.s32.totalorder %s539_s8, %s539_s8 }
   0xf   :  { %p546_p6 = por %p545_p5, %p544_p4 }
  0x11   :  { %p547_p7 = pnand %p546_p6, %p540_p3 }
  0x13   :  { %550 = shalt.err (!%p547_p7)
}
  0x14   :  { %s695_s9 = smov 128   ;;  %s696_s10 = smov 8  }
  0x15   :  { %40 = dma.hbm_to_vmem [thread:$0]  %s906_s1, 512, %s35_s22, [#allocation6], %s695_s9, %s695_s9, %s696_s10  }
  0x16   :  { %s551_s15 = scalar_lea.hbm %s905_s0, 256 }
  0x17   :  { %p552_p8 = scmp.ne.s32.totalorder %s905_s0, %s551_s15  ;;  %p555_p9 = scmp.lt.u32.totalorder %s551_s15, %s905_s0 }
  0x19   :  { %p557_p10 = pnand %p555_p9, %p552_p8 }
  0x1b   :  { %560 = shalt.err (!%p557_p10)
}
  0x1c   :  { %s561_s20 = scalar_lea.vmem %s737_s24, 256  ;;  %p566_p12 = scmp.lt.s32.totalorder %s737_s24, %s737_s24 }
  0x1d   :  { %p562_p11 = scmp.ne.s32.totalorder %s737_s24, %s561_s20  ;;  %p567_p13 = scmp.lt.s32.totalorder %s561_s20, %s561_s20 }
  0x1f   :  { %p568_p0 = por %p567_p13, %p566_p12 }
  0x21   :  { %p569_p1 = pnand %p568_p0, %p562_p11 }
  0x23   :  { %572 = shalt.err (!%p569_p1)
}
  0x24   :  { %28 = dma.hbm_to_vmem [thread:$0]  %s905_s0, 256, %s737_s24, [#allocation3], %s695_s9, %s695_s9, %s696_s10  }
  0x25   :  { %s697_s22 = smov [#allocation7]   ;;  %s698_s25 = smov [#allocation8]  }
  0x26   :  { %s46_s23 = sshll.u32 %s697_s22, 4  ;;  %s58_s26 = sshll.u32 %s698_s25, 4  ;;  %s47_s23 = int_to_ptr.vmem [resolvable:$true] %s46_s23  ;;  %s774_s26 = int_to_ptr.vmem [resolvable:$true] %s58_s26 }
  0x27   :  { %s573_s29 = scalar_lea.hbm %s907_s2, 512 }
  0x28   :  { %p574_p2 = scmp.ne.s32.totalorder %s907_s2, %s573_s29  ;;  %p577_p3 = scmp.lt.u32.totalorder %s573_s29, %s907_s2 }
  0x2a   :  { %p579_p4 = pnand %p577_p3, %p574_p2 }
  0x2c   :  { %582 = shalt.err (!%p579_p4)
}
  0x2d   :  { %s583_s0 = scalar_lea.vmem %s47_s23, 512  ;;  %p588_p6 = scmp.lt.s32.totalorder %s47_s23, %s47_s23 }
  0x2e   :  { %p584_p5 = scmp.ne.s32.totalorder %s47_s23, %s583_s0  ;;  %p589_p7 = scmp.lt.s32.totalorder %s583_s0, %s583_s0 }
  0x30   :  { %p590_p8 = por %p589_p7, %p588_p6 }
  0x32   :  { %p591_p9 = pnand %p590_p8, %p584_p5 }
  0x34   :  { %594 = shalt.err (!%p591_p9)
}
  0x35   :  { %52 = dma.hbm_to_vmem [thread:$0]  %s907_s2, 512, %s47_s23, [#allocation6], %s695_s9, %s695_s9, %s696_s10  }
  0x36   :  { %s595_s15 = scalar_lea.hbm %s908_s3, 512 }
  0x37   :  { %p596_p10 = scmp.ne.s32.totalorder %s908_s3, %s595_s15  ;;  %p599_p11 = scmp.lt.u32.totalorder %s595_s15, %s908_s3 }
  0x39   :  { %p601_p12 = pnand %p599_p11, %p596_p10 }
  0x3b   :  { %604 = shalt.err (!%p601_p12)
}
  0x3c   :  { %s605_s20 = scalar_lea.vmem %s774_s26, 512  ;;  %p610_p0 = scmp.lt.s32.totalorder %s774_s26, %s774_s26 }
  0x3d   :  { %p606_p13 = scmp.ne.s32.totalorder %s774_s26, %s605_s20  ;;  %p611_p1 = scmp.lt.s32.totalorder %s605_s20, %s605_s20 }
  0x3f   :  { %p612_p2 = por %p611_p1, %p610_p0 }
  0x41   :  { %p613_p3 = pnand %p612_p2, %p606_p13 }
  0x43   :  { %616 = shalt.err (!%p613_p3)
}
  0x44   :  { %64 = dma.hbm_to_vmem [thread:$0]  %s908_s3, 512, %s774_s26, [#allocation9], %s695_s9, %s695_s9, %s696_s10  }
  0x45   :  { %683 = dma.done.wait [#allocation3], 256  }
  0x46   :  { %684 = vsyncadd [#allocation3], 4294967040 }
  0x47   :  { %685 = dma.done.wait [#allocation6], 1024  }
  0x48   :  { %686 = vsyncadd [#allocation6], 4294966272 }
  0x49   :  { %687 = dma.done.wait [#allocation9], 512  }
  0x4a   :  { %688 = vsyncadd [#allocation9], 4294966784  ;;  %vm83_vm0 = vcmask 261120   ;;  %v79_v1 = vld [vmem:[#allocation5] sm:$0xff]  ;;  %v80_v2 = vld [vmem:[#allocation5 + $0x8] sm:$0xff]  ;;  %s699_s3 = smov [#allocation10]  }
  0x4b   :  { %vm813_vm1 = vmpackc.low %vm83_vm0, %vm83_vm0  ;;  %v81_v3 = vld [vmem:[#allocation5 + $0x10] sm:$0xff]  ;;  %v484_v4 = vpack.c.bf16 %v80_v2, %v79_v1  ;;  %v82_v5 = vld [vmem:[#allocation5 + $0x18] sm:$0xff]  ;;  %s370_s21 = sshll.u32 %s699_s3, 4  ;;  %s700_s22 = smov [#allocation11]   ;;  %s371_s21 = int_to_ptr.vmem [resolvable:$true] %s370_s21 }
  0x4c   :  { %v179_v6 = vld [vmem:[#allocation7] sm:$0xff]  ;;  %v180_v7 = vld [vmem:[#allocation7 + $0x8] sm:$0xff]  ;;  %v490_v8 = vpack.c.bf16 %v82_v5, %v81_v3  ;;  %v77_v10 = vld [vmem:[#allocation2] sm:$0xff]  ;;  %s382_s23 = sshll.u32 %s700_s22, 4  ;;  %s617_s25 = scalar_lea.vmem %s371_s21, 256  ;;  %s848_s23 = int_to_ptr.vmem [resolvable:$true] %s382_s23 }
  0x4d   :  { %v496_v9 = vpack.c.bf16 %v180_v7, %v179_v6  ;;  %486 = vmatprep.subr.msk.bf16.mxu0 %vm813_vm1, %v484_v4  ;;  %459 = vmatprep.mubr.msk.f32.mxu0 %vm83_vm0, %v77_v10  ;;  %v181_v11 = vld [vmem:[#allocation7 + $0x10] sm:$0xff]  ;;  %v182_v12 = vld [vmem:[#allocation7 + $0x18] sm:$0xff]  ;;  %v272_v14 = vld [vmem:[#allocation8] sm:$0xff]  ;;  %p618_p4 = scmp.ne.s32.totalorder %s371_s21, %s617_s25  ;;  %p622_p5 = scmp.lt.s32.totalorder %s371_s21, %s371_s21 }
  0x4e   :  { %489 = vmatpush3.bf16.xpose.msk.msra.mxu0 %vm813_vm1, %v484_v4  ;;  %v502_v13 = vpack.c.bf16 %v182_v12, %v181_v11  ;;  %v273_v15 = vld [vmem:[#allocation8 + $0x8] sm:$0xff]  ;;  %470 = vmatprep.mubr.msk.f32.mxu1 %vm83_vm0, %v77_v10  ;;  %v274_v17 = vld [vmem:[#allocation8 + $0x10] sm:$0xff]  ;;  %v275_v18 = vld [vmem:[#allocation8 + $0x18] sm:$0xff]  ;;  %p623_p6 = scmp.lt.s32.totalorder %s617_s25, %s617_s25 }
  0x4f   :  { %498 = vmatprep.subr.msk.bf16.mxu1 %vm813_vm1, %v496_v9  ;;  %492 = vmatprep.subr.msk.bf16.mxu0 %vm813_vm1, %v490_v8  ;;  %v508_v16 = vpack.c.bf16 %v273_v15, %v272_v14  ;;  %v78_v19 = vld [vmem:[#allocation2 + $0x8] sm:$0xff]  ;;  %v514_v20 = vpack.c.bf16 %v275_v18, %v274_v17 }
  0x50   :  { %501 = vmatpush3.bf16.xpose.msk.msra.mxu1 %vm813_vm1, %v496_v9  ;;  %p624_p7 = por %p623_p6, %p622_p5 }
  0x51   :  { %504 = vmatprep.subr.msk.bf16.mxu1 %vm813_vm1, %v502_v13 }
  0x52   :  { %p625_p8 = pnand %p624_p7, %p618_p4 }
  0x56   :  { %495 = vmatpush3.bf16.xpose.msk.msra.mxu0 %vm813_vm1, %v490_v8 }
  0x57   :  { %510 = vmatprep.subr.msk.bf16.mxu0 %vm813_vm1, %v508_v16 }
  0x58   :  { %507 = vmatpush3.bf16.xpose.msk.msra.mxu1 %vm813_vm1, %v502_v13 }
  0x5d   :  { %460 = vmatmul.mubr.msk.f32.vlgmr.msra.gmra.mrb[0].mxu0 %vm83_vm0, %v78_v19 }
  0x5e   :  { %513 = vmatpush3.bf16.xpose.msk.msra.mxu0 %vm813_vm1, %v508_v16  ;;  %481 = vmatprep.mubr.msk.f32.mxu0 %vm83_vm0, %v77_v10 }
  0x5f   :  { %471 = vmatmul.mubr.msk.f32.vlgmr.msra.gmra.mrb[0].mxu1 %vm83_vm0, %v78_v19  ;;  %516 = vmatprep.subr.msk.bf16.mxu0 %vm813_vm1, %v514_v20 }
  0x66   :  { %519 = vmatpush3.bf16.xpose.msk.msra.mxu0 %vm813_vm1, %v514_v20 }
  0x6d   :  { %482 = vmatmul.mubr.msk.f32.vlgmr.msra.gmra.mrb[2].mxu0 %vm83_vm0, %v78_v19 }
 0x130   :  { %v461_v21 = vpop.f32.mrb[0].mxu0 }
 0x131   :  { %178 = vst.msk [vmem:[#allocation10 + $0x8] sm:$0xff] %vm83_vm0, %v461_v21  ;;  %v168_v22 = vpop.f32.mrb[1].mxu0 }
 0x132   :  { %v472_v23 = vpop.f32.mrb[0].mxu1  ;;  %177 = vst.msk [vmem:[#allocation10] sm:$0xff] %vm83_vm0, %v168_v22 }
 0x133   :  { %271 = vst.msk [vmem:[#allocation11 + $0x8] sm:$0xff] %vm83_vm0, %v472_v23  ;;  %v261_v24 = vpop.f32.mrb[1].mxu1 }
 0x134   :  { %270 = vst.msk [vmem:[#allocation11] sm:$0xff] %vm83_vm0, %v261_v24 }
 0x135   :  { %628 = shalt.err (!%p625_p8)
}
 0x136   :  { %s629_s28 = scalar_lea.hbm %s909_s4, 256 }
 0x137   :  { %p630_p9 = scmp.ne.s32.totalorder %s909_s4, %s629_s28  ;;  %p633_p10 = scmp.lt.u32.totalorder %s629_s28, %s909_s4 }
 0x139   :  { %p635_p11 = pnand %p633_p10, %p630_p9 }
 0x13b   :  { %638 = shalt.err (!%p635_p11)
}
 0x13c   :  { %376 = dma.vmem_to_hbm [thread:$0]  %s371_s21, 256, %s909_s4, [#allocation4], %s695_s9, %s695_s9, %s696_s10  }
 0x13d   :  { %s639_s24 = scalar_lea.vmem %s848_s23, 256  ;;  %p644_p13 = scmp.lt.s32.totalorder %s848_s23, %s848_s23 }
 0x13e   :  { %p640_p12 = scmp.ne.s32.totalorder %s848_s23, %s639_s24  ;;  %p645_p0 = scmp.lt.s32.totalorder %s639_s24, %s639_s24 }
 0x140   :  { %p646_p1 = por %p645_p0, %p644_p13 }
 0x142   :  { %p647_p2 = pnand %p646_p1, %p640_p12 }
 0x144   :  { %650 = shalt.err (!%p647_p2)
}
 0x145   :  { %s651_s14 = scalar_lea.hbm %s910_s5, 256 }
 0x146   :  { %p652_p3 = scmp.ne.s32.totalorder %s910_s5, %s651_s14  ;;  %p655_p4 = scmp.lt.u32.totalorder %s651_s14, %s910_s5 }
 0x148   :  { %p657_p5 = pnand %p655_p4, %p652_p3 }
 0x14a   :  { %660 = shalt.err (!%p657_p5)
}
 0x14b   :  { %388 = dma.vmem_to_hbm [thread:$0]  %s848_s23, 256, %s910_s5, [#allocation12], %s695_s9, %s695_s9, %s696_s10   ;;  %v483_v25 = vpop.f32.mrb[2].mxu0 }
 0x14c   :  { %s701_s20 = smov [#allocation13]   ;;  %364 = vst.msk [vmem:[#allocation13 + $0x8] sm:$0xff] %vm83_vm0, %v483_v25  ;;  %v354_v26 = vpop.f32.mrb[3].mxu0 }
 0x14d   :  { %s394_s2 = sshll.u32 %s701_s20, 4  ;;  %363 = vst.msk [vmem:[#allocation13] sm:$0xff] %vm83_vm0, %v354_v26  ;;  %s395_s2 = int_to_ptr.vmem [resolvable:$true] %s394_s2 }
 0x14e   :  { %s661_s1 = scalar_lea.vmem %s395_s2, 256  ;;  %p666_p7 = scmp.lt.s32.totalorder %s395_s2, %s395_s2 }
 0x14f   :  { %p662_p6 = scmp.ne.s32.totalorder %s395_s2, %s661_s1  ;;  %p667_p8 = scmp.lt.s32.totalorder %s661_s1, %s661_s1 }
 0x151   :  { %p668_p9 = por %p667_p8, %p666_p7 }
 0x153   :  { %p669_p10 = pnand %p668_p9, %p662_p6 }
 0x155   :  { %672 = shalt.err (!%p669_p10)
}
 0x156   :  { %s673_s5 = scalar_lea.hbm %s911_s6, 256 }
 0x157   :  { %p674_p11 = scmp.ne.s32.totalorder %s911_s6, %s673_s5  ;;  %p677_p12 = scmp.lt.u32.totalorder %s673_s5, %s911_s6 }
 0x159   :  { %p679_p13 = pnand %p677_p12, %p674_p11 }
 0x15b   :  { %682 = shalt.err (!%p679_p13)
}
 0x15c   :  { %400 = dma.vmem_to_hbm [thread:$0]  %s395_s2, 256, %s911_s6, [#allocation12], %s695_s9, %s695_s9, %s696_s10  }
 0x15d   :  { %689 = dma.done.wait [#allocation4], 256  }
 0x15e   :  { %690 = vsyncadd [#allocation4], 4294967040 }
 0x15f   :  { %691 = dma.done.wait [#allocation12], 512  }
 0x160   :  { %692 = vsyncadd [#allocation12], 4294966784 }
 0x161   :  { %410 = vsyncpa [#allocation3], 1 }
 0x162   :  { %411 = vsyncpa [#allocation6], 1 }
 0x163   :  { %412 = vsyncpa [#allocation9], 1 }
 0x164   :  { %413 = vsyncpa [#allocation4], 1 }
 0x165   :  { %414 = vsyncpa [#allocation12], 1 }

</bundles_post_ra>
